<compile_context>
chip_gen: v7x
topology: tpu7x:2x2x1
jax: 0.10.0
libtpu: 0.0.40
codegen_flags: <defaults>
</compile_context>

<pallas_src>
import functools
import math

import jax
import jax.numpy as jnp
from jax.experimental import pallas as pl
from jax.experimental.pallas import tpu as pltpu


def _vmem_limit_bytes():
    """Scoped-VMEM budget; never assumes more than v7x's 64 MiB per-core VMEM."""
    try:
        cap = int(pltpu.get_tpu_info().vmem_capacity_bytes)
    except Exception:
        cap = 64 * 1024 * 1024  # conservative fallback: v7x-class per-core VMEM
    return max(16 * 1024 * 1024, min(cap // 2, 32 * 1024 * 1024))


def _pick_tm(batch, r, vmem_budget, override=None):
    """Feature rows (of 128 lanes) processed per grid step.

    ~2048 rows (~1-2 MB of x per step) is already past the ~85%-of-roofline
    tile-size knee; bigger tiles only inflate pipeline fill/drain.  The VMEM
    accounting covers up-to-3x-buffered x tiles, the 2 manual weight buffers
    and the x*w product / mask-iota temporaries.
    """
    if override is not None:
        tm = min(int(override), r)
    else:
        bytes_per_row = (4 * batch + 3) * 128 * 4  # 3B x-bufs + 2 w-bufs + B prod + iota
        cap = max(8, ((vmem_budget // 2) // bytes_per_row) // 8 * 8)
        tm = min(2048, cap, r)
    if tm < r:
        tm = max(8, (tm // 8) * 8)  # block rows must be 8-aligned unless == full dim
    return tm


def _half_dot_kernel(x_ref, w_hbm, o_ref, wbuf, wsem, *,
                     base_row, tm, r_valid, nb, r_total):
    """Accumulates sum_f x[b, f] * w_packed[base_row*128 + f] for one image half.

    x_ref: (B, tm, 128)   auto-pipelined tile of the flattened image
    w_hbm: (r_total, 128) full packed nn.Linear weight, left in HBM (pl.ANY)
    o_ref: (B, 128)       resident f32 accumulator block (lane axis reduced in JAX)
    wbuf:  (2, tm, 128)   manual double buffer for the weight tiles
    wsem:  (2,)           DMA semaphores for wbuf
    """
    i = pl.program_id(0)
    slot = i % 2

    def w_src(tile_idx):
        # Clamp the last tile so the DMA never reads past the packed weight;
        # the (static) row shift this may introduce is undone with a roll below.
        start = jnp.minimum(base_row + tile_idx * tm, r_total - tm)
        return w_hbm.at[pl.ds(start, tm), :]

    @pl.when(i == 0)
    def _():
        o_ref[...] = jnp.zeros_like(o_ref)
        pltpu.make_async_copy(w_src(0), wbuf.at[0], wsem.at[0]).start()

    # Prefetch the next weight tile into the buffer whose data was consumed
    # on the previous step (classic double buffer).
    @pl.when(i + 1 < nb)
    def _():
        pltpu.make_async_copy(w_src(i + 1), wbuf.at[1 - slot],
                              wsem.at[1 - slot]).start()

    # Wait for this step's weight tile (only dst shape + semaphore matter).
    pltpu.make_async_copy(w_src(i), wbuf.at[slot], wsem.at[slot]).wait()

    x = x_ref[...].astype(jnp.float32)   # (B, tm, 128)
    w = wbuf[slot].astype(jnp.float32)   # (tm, 128)

    rem = r_valid - (nb - 1) * tm                     # valid rows in the last tile
    d_last = max(0, base_row + nb * tm - r_total)     # static clamp shift of last tile

    if rem == tm:
        # Feature rows divide evenly into tiles: every step is dense, no mask.
        o_ref[...] += jnp.sum(x * w[None, :, :], axis=1)
    else:
        is_last = i == nb - 1

        @pl.when(jnp.logical_not(is_last))
        def _():
            o_ref[...] += jnp.sum(x * w[None, :, :], axis=1)

        @pl.when(is_last)
        def _():
            # Undo the (static) DMA clamp shift, then discard the ragged tail
            # with a select.  Stale VMEM rows of x (and the other image's
            # weight rows) may hold anything, including NaN, so the product is
            # select-masked rather than multiplied by a 0/1 mask.
            wl = pltpu.roll(w, shift=tm - d_last, axis=0) if d_last else w
            prod = x * wl[None, :, :]
            rows = jax.lax.broadcasted_iota(jnp.int32, (tm, 128), 0)
            prod = jnp.where((rows < rem)[None, :, :], prod, 0.0)
            o_ref[...] += jnp.sum(prod, axis=1)


def _half_dot(x3, w2d, *, base_row, r_valid, tm, vmem_budget):
    """Per-batch partial dot of x3 (B, r_valid, 128) with the packed-weight rows
    [base_row, base_row + r_valid).  Returns f32 (B, 128) lane-partial sums."""
    B, r, _ = x3.shape
    assert r == r_valid
    r_total = w2d.shape[0]
    nb = -(-r_valid // tm)

    kernel = functools.partial(
        _half_dot_kernel, base_row=base_row, tm=tm, r_valid=r_valid, nb=nb,
        r_total=r_total)

    x_spec_kwargs = {}
    if nb >= 4:
        # Enough tiles for a deeper pipeline to hide DMA-issue jitter.
        x_spec_kwargs["pipeline_mode"] = pl.Buffered(3)

    return pl.pallas_call(
        kernel,
        out_shape=jax.ShapeDtypeStruct((B, 128), jnp.float32),
        grid_spec=pltpu.PrefetchScalarGridSpec(
            num_scalar_prefetch=0,
            grid=(nb,),
            in_specs=[
                pl.BlockSpec((B, tm, 128), lambda i: (0, i, 0), **x_spec_kwargs),
                pl.BlockSpec(memory_space=pl.ANY),   # packed weight stays in HBM
            ],
            out_specs=pl.BlockSpec((B, 128), lambda i: (0, 0)),
            scratch_shapes=[
                pltpu.VMEM((2, tm, 128), w2d.dtype),
                pltpu.SemaphoreType.DMA((2,)),
            ],
        ),
        compiler_params=pltpu.CompilerParams(
            dimension_semantics=("arbitrary",),
            vmem_limit_bytes=vmem_budget,
        ),
    )(x3, w2d)


def t1flairnet_forward(t1_img, flair_img, weight, bias, *, tm=None):
    """T1FlairNet forward.  weight: [1, F1+F2] (nn.Linear layout), bias: [1]."""
    B = t1_img.shape[0]
    assert flair_img.shape[0] == B
    F1 = math.prod(t1_img.shape[1:])
    F2 = math.prod(flair_img.shape[1:])
    assert weight.shape == (1, F1 + F2)

    if F1 % 128 == 0 and F2 % 128 == 0:
        r1, r2 = F1 // 128, F2 // 128
        # Free (layout-preserving) reshapes: no concat / slice / transpose copies.
        x1 = t1_img.reshape(B, r1, 128)
        x2 = flair_img.reshape(B, r2, 128)
        w2d = weight.reshape(r1 + r2, 128)     # single packed weight, never sliced

        vmem_budget = _vmem_limit_bytes()
        tm1 = _pick_tm(B, r1, vmem_budget, override=tm)
        tm2 = _pick_tm(B, r2, vmem_budget, override=tm)

        p1 = _half_dot(x1, w2d, base_row=0, r_valid=r1, tm=tm1,
                       vmem_budget=vmem_budget)
        p2 = _half_dot(x2, w2d, base_row=r1, r_valid=r2, tm=tm2,
                       vmem_budget=vmem_budget)
        y = (p1 + p2).sum(axis=1)[:, None] + bias        # [B, 1]
        return y.astype(t1_img.dtype)

    # Ragged (<128-aligned) feature counts are not produced by realistic image
    # shapes; tiny plain-JAX fallback keeps semantics exact.
    x = jnp.concatenate([t1_img.reshape(B, -1), flair_img.reshape(B, -1)], axis=1)
    return (x @ weight.T + bias).astype(t1_img.dtype)


if __name__ == "__main__":
    key = jax.random.PRNGKey(0)
    k_t1, k_fl, k_w, k_b = jax.random.split(key, 4)

    def run_case(B, C, H, W, tm):
        F = C * H * W
        t1 = jax.random.normal(k_t1, (B, C, H, W), dtype=jnp.float32)
        flair = jax.random.normal(k_fl, (B, C, H, W), dtype=jnp.float32)
        weight = jax.random.normal(k_w, (1, 2 * F), dtype=jnp.float32) * 0.01
        bias = jax.random.normal(k_b, (1,), dtype=jnp.float32)

        y = jax.block_until_ready(
            t1flairnet_forward(t1, flair, weight, bias, tm=tm))

        # Pure-JAX reference of the same forward pass.
        x_ref = jnp.concatenate([t1.reshape(B, -1), flair.reshape(B, -1)], axis=1)
        y_ref = x_ref @ weight.T + bias
        assert y.shape == (B, 1)
        assert jnp.allclose(y, y_ref, atol=1e-4, rtol=1e-4), (y, y_ref)

    # Single-tile path: F1 = F2 = 1024 -> 8 feature rows per image, one grid step.
    run_case(B=2, C=4, H=16, W=16, tm=None)
    # Multi-step reduction exercising the double-buffered packed-weight DMA:
    # F1 = F2 = 3072 -> 24 rows, tm=8 -> 3 tiles per half (flair weight rows
    # read at packed-row offset 24, no slice copy).
    run_case(B=2, C=12, H=16, W=16, tm=8)

    print("KERNEL_OK")
</pallas_src>

<mosaic_0001>
module attributes {stable_mosaic.version = 11 : i64} {
  func.func @_half_dot_kernel(%arg0: i32, %arg1: memref<2x8x128xf32, #tpu.memory_space<vmem>>, %arg2: memref<16x128xf32, #tpu.memory_space<any>>, %arg3: memref<2x128xf32, #tpu.memory_space<vmem>>, %arg4: memref<2x8x128xf32, #tpu.memory_space<vmem>>, %arg5: memref<2x!tpu.dma_semaphore, #tpu.memory_space<semaphore_mem>>) attributes {dimension_semantics = [#tpu.dimension_semantics<arbitrary>], iteration_bounds = array<i64: 1>, scalar_prefetch = 0 : i64, scratch_operands = 2 : i64, tpu.core_type = #tpu.core_type<tc>, window_params = [{transform_indices = @transform_0, window_bounds = array<i64: 2, 8, 128>}, {}, {pipeline_mode = #tpu.pipeline_mode<synchronous>, transform_indices = @transform_2, window_bounds = array<i64: 2, 128>}]} {
    %c2_i32 = arith.constant 2 : i32
    %c0_i32 = arith.constant 0 : i32
    %0 = arith.cmpi eq, %c2_i32, %c0_i32 : i32
    %c1_i32 = arith.constant 1 : i32
    %1 = arith.select %0, %c1_i32, %c2_i32 : i32
    %2 = arith.remsi %arg0, %1 : i32
    %c0_i32_0 = arith.constant 0 : i32
    %3 = arith.cmpi ne, %2, %c0_i32_0 : i32
    %c0_i32_1 = arith.constant 0 : i32
    %4 = arith.cmpi slt, %2, %c0_i32_1 : i32
    %c0_i32_2 = arith.constant 0 : i32
    %5 = arith.cmpi slt, %1, %c0_i32_2 : i32
    %6 = arith.xori %4, %5 : i1
    %7 = arith.andi %6, %3 : i1
    %8 = arith.addi %2, %1 : i32
    %9 = arith.select %7, %8, %2 : i32
    %c0_i32_3 = arith.constant 0 : i32
    %10 = arith.cmpi eq, %arg0, %c0_i32_3 : i32
    %11 = arith.extui %10 : i1 to i32
    %c0_i32_4 = arith.constant 0 : i32
    %12 = arith.cmpi ne, %11, %c0_i32_4 : i32
    scf.if %12 {
      %cst_21 = arith.constant 0.000000e+00 : f32
      %36 = vector.broadcast %cst_21 : f32 to vector<2x128xf32>
      %c0_22 = arith.constant 0 : index
      %c0_23 = arith.constant 0 : index
      %37 = vector.load %arg3[%c0_22, %c0_23] : memref<2x128xf32, #tpu.memory_space<vmem>>, vector<2x128xf32>
      tpu.vector_store %arg3[%c0_22, %c0_23], %36 {strides = array<i32>} : memref<2x128xf32, #tpu.memory_space<vmem>>, vector<2x128xf32>,
      %c0_i32_24 = arith.constant 0 : i32
      %c8_i32_25 = arith.constant 8 : i32
      %38 = arith.minsi %c0_i32_24, %c8_i32_25 : i32
      %c0_i32_26 = arith.constant 0 : i32
      %c0_i32_27 = arith.constant 0 : i32
      %c0_i32_28 = arith.constant 0 : i32
      %39 = tpu.memref_slice %arg2[%38, %c0_i32_28] : memref<16x128xf32, #tpu.memory_space<any>> -> memref<8x128xf32, #tpu.memory_space<any>>
      %c0_i32_29 = arith.constant 0 : i32
      %c0_i32_30 = arith.constant 0 : i32
      %40 = tpu.memref_slice %arg4[%c0_i32_26, %c0_i32_29, %c0_i32_30] : memref<2x8x128xf32, #tpu.memory_space<vmem>> -> memref<1x8x128xf32, #tpu.memory_space<vmem>>
      %41 = tpu.memref_squeeze %40 : memref<1x8x128xf32, #tpu.memory_space<vmem>> -> memref<8x128xf32, #tpu.memory_space<vmem>>
      %42 = tpu.memref_slice %arg5[%c0_i32_27] : memref<2x!tpu.dma_semaphore, #tpu.memory_space<semaphore_mem>> -> memref<1x!tpu.dma_semaphore, #tpu.memory_space<semaphore_mem>>
      %43 = tpu.memref_squeeze %42 : memref<1x!tpu.dma_semaphore, #tpu.memory_space<semaphore_mem>> -> memref<!tpu.dma_semaphore, #tpu.memory_space<semaphore_mem>>
      tpu.enqueue_dma source(%39 : memref<8x128xf32, #tpu.memory_space<any>>) target(%41 : memref<8x128xf32, #tpu.memory_space<vmem>>) target_semaphore(%43 : memref<!tpu.dma_semaphore, #tpu.memory_space<semaphore_mem>>)
    } else {
    }
    %c1_i32_5 = arith.constant 1 : i32
    %13 = arith.addi %arg0, %c1_i32_5 : i32
    %c1_i32_6 = arith.constant 1 : i32
    %14 = arith.cmpi slt, %13, %c1_i32_6 : i32
    %15 = arith.extui %14 : i1 to i32
    %c0_i32_7 = arith.constant 0 : i32
    %16 = arith.cmpi ne, %15, %c0_i32_7 : i32
    scf.if %16 {
      %c1_i32_21 = arith.constant 1 : i32
      %36 = arith.addi %arg0, %c1_i32_21 : i32
      %c8_i32_22 = arith.constant 8 : i32
      %37 = arith.muli %36, %c8_i32_22 : i32
      %c0_i32_23 = arith.constant 0 : i32
      %38 = arith.addi %c0_i32_23, %37 : i32
      %c8_i32_24 = arith.constant 8 : i32
      %39 = arith.minsi %38, %c8_i32_24 : i32
      %c1_i32_25 = arith.constant 1 : i32
      %40 = arith.subi %c1_i32_25, %9 : i32
      %c1_i32_26 = arith.constant 1 : i32
      %41 = arith.subi %c1_i32_26, %9 : i32
      %c0_i32_27 = arith.constant 0 : i32
      %42 = tpu.memref_slice %arg2[%39, %c0_i32_27] : memref<16x128xf32, #tpu.memory_space<any>> -> memref<8x128xf32, #tpu.memory_space<any>>
      %c0_i32_28 = arith.constant 0 : i32
      %c0_i32_29 = arith.constant 0 : i32
      %43 = tpu.memref_slice %arg4[%40, %c0_i32_28, %c0_i32_29] : memref<2x8x128xf32, #tpu.memory_space<vmem>> -> memref<1x8x128xf32, #tpu.memory_space<vmem>>
      %44 = tpu.memref_squeeze %43 : memref<1x8x128xf32, #tpu.memory_space<vmem>> -> memref<8x128xf32, #tpu.memory_space<vmem>>
      %45 = tpu.memref_slice %arg5[%41] : memref<2x!tpu.dma_semaphore, #tpu.memory_space<semaphore_mem>> -> memref<1x!tpu.dma_semaphore, #tpu.memory_space<semaphore_mem>>
      %46 = tpu.memref_squeeze %45 : memref<1x!tpu.dma_semaphore, #tpu.memory_space<semaphore_mem>> -> memref<!tpu.dma_semaphore, #tpu.memory_space<semaphore_mem>>
      tpu.enqueue_dma source(%42 : memref<8x128xf32, #tpu.memory_space<any>>) target(%44 : memref<8x128xf32, #tpu.memory_space<vmem>>) target_semaphore(%46 : memref<!tpu.dma_semaphore, #tpu.memory_space<semaphore_mem>>)
    } else {
    }
    %c8_i32 = arith.constant 8 : i32
    %17 = arith.muli %arg0, %c8_i32 : i32
    %c0_i32_8 = arith.constant 0 : i32
    %18 = arith.addi %c0_i32_8, %17 : i32
    %c8_i32_9 = arith.constant 8 : i32
    %19 = arith.minsi %18, %c8_i32_9 : i32
    %c0_i32_10 = arith.constant 0 : i32
    %20 = tpu.memref_slice %arg2[%19, %c0_i32_10] : memref<16x128xf32, #tpu.memory_space<any>> -> memref<8x128xf32, #tpu.memory_space<any>>
    %c0_i32_11 = arith.constant 0 : i32
    %c0_i32_12 = arith.constant 0 : i32
    %21 = tpu.memref_slice %arg4[%9, %c0_i32_11, %c0_i32_12] : memref<2x8x128xf32, #tpu.memory_space<vmem>> -> memref<1x8x128xf32, #tpu.memory_space<vmem>>
    %22 = tpu.memref_squeeze %21 : memref<1x8x128xf32, #tpu.memory_space<vmem>> -> memref<8x128xf32, #tpu.memory_space<vmem>>
    %23 = tpu.memref_slice %arg5[%9] : memref<2x!tpu.dma_semaphore, #tpu.memory_space<semaphore_mem>> -> memref<1x!tpu.dma_semaphore, #tpu.memory_space<semaphore_mem>>
    %24 = tpu.memref_squeeze %23 : memref<1x!tpu.dma_semaphore, #tpu.memory_space<semaphore_mem>> -> memref<!tpu.dma_semaphore, #tpu.memory_space<semaphore_mem>>
    tpu.wait_dma2 semaphore(%24 : memref<!tpu.dma_semaphore, #tpu.memory_space<semaphore_mem>>) src(%20 : memref<8x128xf32, #tpu.memory_space<any>>) dst(%22 : memref<8x128xf32, #tpu.memory_space<vmem>>)
    %c0 = arith.constant 0 : index
    %c0_13 = arith.constant 0 : index
    %c0_14 = arith.constant 0 : index
    %25 = vector.load %arg1[%c0, %c0_13, %c0_14] : memref<2x8x128xf32, #tpu.memory_space<vmem>>, vector<2x8x128xf32>
    %26 = arith.index_cast %9 : i32 to index
    %c0_15 = arith.constant 0 : index
    %c0_16 = arith.constant 0 : index
    %27 = vector.load %arg4[%26, %c0_15, %c0_16] : memref<2x8x128xf32, #tpu.memory_space<vmem>>, vector<1x8x128xf32>
    %28 = vector.shape_cast %27 : vector<1x8x128xf32> to vector<8x128xf32>
    %c0_17 = arith.constant 0 : index
    %c0_18 = arith.constant 0 : index
    %29 = vector.load %arg3[%c0_17, %c0_18] : memref<2x128xf32, #tpu.memory_space<vmem>>, vector<2x128xf32>
    %30 = vector.shape_cast %28 : vector<8x128xf32> to vector<1x8x128xf32>
    %31 = vector.broadcast %30 : vector<1x8x128xf32> to vector<2x8x128xf32>
    %32 = arith.mulf %25, %31 : vector<2x8x128xf32>
    %cst = arith.constant dense<0.000000e+00> : vector<2x128xf32>
    %33 = vector.multi_reduction <add>, %32, %cst [1] : vector<2x8x128xf32> to vector<2x128xf32>
    %34 = arith.addf %29, %33 : vector<2x128xf32>
    %c0_19 = arith.constant 0 : index
    %c0_20 = arith.constant 0 : index
    %35 = vector.load %arg3[%c0_19, %c0_20] : memref<2x128xf32, #tpu.memory_space<vmem>>, vector<2x128xf32>
    tpu.vector_store %arg3[%c0_19, %c0_20], %34 {strides = array<i32>} : memref<2x128xf32, #tpu.memory_space<vmem>>, vector<2x128xf32>,
    return
  }
  func.func @transform_0(%arg0: i32) -> (i32, i32, i32) {
    %c0_i32 = arith.constant 0 : i32
    %c0_i32_0 = arith.constant 0 : i32
    %c0_i32_1 = arith.constant 0 : i32
    return %c0_i32, %arg0, %c0_i32_0 : i32, i32, i32
  }
  func.func @transform_2(%arg0: i32) -> (i32, i32) {
    %c0_i32 = arith.constant 0 : i32
    %c0_i32_0 = arith.constant 0 : i32
    %c0_i32_1 = arith.constant 0 : i32
    return %c0_i32, %c0_i32_0 : i32, i32
  }
}

</mosaic_0001>

<bundles_post_ra>
// kernel: tpu_custom_call.1
= control target key start
LH: loop header
LB: loop body
LE: loop exit
PB: predicated region body
PF: predicated region fallthrough
CT: control target
= control target key end

     0   :  { %7 = vsyncpa [#allocation5], 0  ;;  %s280_s0 = inlined_call_operand.hbm [shape: f32[2,8,128], index: 0, kind: input, shape index: {}]   ;;  %s281_s1 = inlined_call_operand.hbm [shape: f32[16,128], index: 1, kind: input, shape index: {}]   ;;  %s282_s2 = inlined_call_operand.hbm [shape: f32[2,128], index: 2, kind: output, shape index: {}]  }
   0x1   :  { %8 = vsyncpa [#allocation6], 0  ;;  %s220_s9 = smov [#allocation4]   ;;  %s148_s13 = scalar_lea.hbm %s280_s0, 256 }
   0x2   :  { %s14_s10 = sshll.u32 %s220_s9, 4  ;;  %p149_p0 = scmp.ne.s32.totalorder %s280_s0, %s148_s13  ;;  %s15_s10 = int_to_ptr.vmem [resolvable:$true] %s14_s10 }
   0x3   :  { %p152_p1 = scmp.lt.u32.totalorder %s148_s13, %s280_s0 }
   0x5   :  { %p154_p2 = pnand %p152_p1, %p149_p0 }
   0x7   :  { %157 = shalt.err (!%p154_p2)
}
   0x8   :  { %s158_s18 = scalar_lea.vmem %s15_s10, 256  ;;  %p163_p4 = scmp.lt.s32.totalorder %s15_s10, %s15_s10 }
   0x9   :  { %p159_p3 = scmp.ne.s32.totalorder %s15_s10, %s158_s18  ;;  %p164_p5 = scmp.lt.s32.totalorder %s158_s18, %s158_s18 }
   0xb   :  { %p165_p6 = por %p164_p5, %p163_p4 }
   0xd   :  { %p166_p7 = pnand %p165_p6, %p159_p3 }
   0xf   :  { %169 = shalt.err (!%p166_p7)
}
  0x10   :  { %s221_s19 = smov 128   ;;  %s222_s20 = smov 8  }
  0x11   :  { %20 = dma.hbm_to_vmem [thread:$0]  %s280_s0, 256, %s15_s10, [#allocation5], %s221_s19, %s221_s19, %s222_s20  }
  0x12   :  { %214 = dma.done.wait [#allocation5], 256  }
  0x13   :  { %215 = vsyncadd [#allocation5], 4294967040  ;;  %v223_v0 = vmov 0.0   ;;  %s224_s23 = smov [#allocation2]   ;;  %s170_s27 = scalar_lea.hbm %s281_s1, 128 }
  0x14   :  { %36 = vst [vmem:[#allocation7] sm:$0x3] %v223_v0  ;;  %s44_s24 = sshll.u32 %s224_s23, 4  ;;  %p171_p8 = scmp.ne.s32.totalorder %s281_s1, %s170_s27  ;;  %s45_s24 = int_to_ptr.vmem [resolvable:$true] %s44_s24 }
  0x15   :  { %s172_s4 = scalar_lea.hbm %s281_s1, 256  ;;  %p174_p10 = scmp.lt.u32.totalorder %s170_s27, %s281_s1 }
  0x16   :  { %p173_p9 = scmp.lt.u32.totalorder %s172_s4, %s170_s27 }
  0x18   :  { %p175_p11 = por %p174_p10, %p173_p9 }
  0x1a   :  { %p176_p12 = pnand %p175_p11, %p171_p8 }
  0x1c   :  { %179 = shalt.err (!%p176_p12)  }
  0x1d   :  { %s180_s6 = scalar_lea.vmem %s45_s24, 128  ;;  %s184_s7 = scalar_lea.vmem %s45_s24, 256 }
  0x1e   :  { %p181_p13 = scmp.ne.s32.totalorder %s45_s24, %s180_s6  ;;  %p185_p0 = scmp.lt.s32.totalorder %s45_s24, %s45_s24 }
  0x1f   :  { %p186_p1 = scmp.lt.s32.totalorder %s184_s7, %s180_s6 }
  0x21   :  { %p187_p2 = por %p186_p1, %p185_p0 }
  0x23   :  { %p188_p3 = pnand %p187_p2, %p181_p13 }
  0x25   :  { %191 = shalt.err (!%p188_p3)  }
  0x26   :  { %47 = dma.hbm_to_vmem [thread:$0]  %s281_s1, 128, %s45_s24, [#allocation3] }
  0x27   :  { %216 = dma.done.wait [#allocation3], 128 }
  0x28   :  { %217 = vsyncadd [#allocation3], 4294967168  ;;  %v79_v1 = vld [vmem:[#allocation4] sm:$0xff]  ;;  %v80_v2 = vld [vmem:[#allocation4 + $0x8] sm:$0xff]  ;;  %vm99_vm0 = vcmask 1041409   ;;  %s225_s1 = smov [#allocation7]  }
  0x29   :  { %v81_v3 = vld [vmem:[#allocation2] sm:$0xff]  ;;  %s110_s10 = sshll.u32 %s225_s1, 4  ;;  %s111_s10 = int_to_ptr.vmem [resolvable:$true] %s110_s10 }
  0x2a   :  { %v83_v4 = vmul.f32 %v81_v3, %v79_v1  ;;  %v84_v5 = vmul.f32 %v81_v3, %v80_v2  ;;  %v82_v16 = vld [vmem:[#allocation7] sm:$0x3]  ;;  %s192_s11 = scalar_lea.vmem %s111_s10, 32  ;;  %p197_p5 = scmp.lt.s32.totalorder %s111_s10, %s111_s10 }
  0x2b   :  { %p193_p4 = scmp.ne.s32.totalorder %s111_s10, %s192_s11  ;;  %p198_p6 = scmp.lt.s32.totalorder %s192_s11, %s192_s11 }
  0x2c   :  { %v85_v6 = vrot.slane %v83_v4, 4  ;;  %v91_v7 = vrot.slane %v84_v5, 4 }
  0x2d   :  { %p199_p7 = por %p198_p6, %p197_p5 }
  0x2e   :  { %v86_v8 = vadd.f32 %v85_v6, %v83_v4  ;;  %v92_v9 = vadd.f32 %v91_v7, %v84_v5 }
  0x2f   :  { %p200_p8 = pnand %p199_p7, %p193_p4 }
  0x30   :  { %v87_v10 = vrot.slane %v86_v8, 2  ;;  %v93_v11 = vrot.slane %v92_v9, 2 }
  0x32   :  { %v88_v12 = vadd.f32 %v87_v10, %v86_v8  ;;  %v94_v13 = vadd.f32 %v93_v11, %v92_v9 }
  0x34   :  { %v89_v14 = vrot.slane %v88_v12, 1  ;;  %v95_v15 = vrot.slane %v94_v13, 1 }
  0x36   :  { %v90_v17 = vadd.f32 %v89_v14, %v88_v12  ;;  %v96_v18 = vadd.f32 %v95_v15, %v94_v13 }
  0x38   :  { %v100_v19 = vsel %vm99_vm0, %v96_v18, %v90_v17 }
  0x39   :  { %v102_v20 = vadd.f32 %v100_v19, %v82_v16 }
  0x3b   :  { %103 = vst [vmem:[#allocation7] sm:$0x3] %v102_v20 }
  0x3c   :  { %203 = shalt.err (!%p200_p8)
}
  0x3d   :  { %s204_s14 = scalar_lea.hbm %s282_s2, 32 }
  0x3e   :  { %p205_p9 = scmp.ne.s32.totalorder %s282_s2, %s204_s14  ;;  %p208_p10 = scmp.lt.u32.totalorder %s204_s14, %s282_s2 }
  0x40   :  { %p210_p11 = pnand %p208_p10, %p205_p9 }
  0x42   :  { %213 = shalt.err (!%p210_p11)
}
  0x43   :  { %113 = dma.vmem_to_hbm [thread:$0]  %s111_s10, 32, %s282_s2, [#allocation6]  }
  0x44   :  { %218 = dma.done.wait [#allocation6], 32  }
  0x45   :  { %219 = vsyncadd [#allocation6], 4294967264 }
  0x46   :  { %117 = vsyncpa [#allocation5], 1 }
  0x47   :  { %118 = vsyncpa [#allocation6], 1 }
  0x48   :  { %119 = vsyncmov [#allocation3] }
  0x4b   :  { %s120_s21 = vpop.sfrf %119 }
  0x4c   :  { %p140_p12 = scmp.ne.s32.totalorder %s120_s21, 0 }
  0x4e   :  { %124 = shalt.err (%p140_p12)  }
  0x4f   :  { %126 = vsyncmov [#allocation3 + $0x1] }
  0x52   :  { %s127_s22 = vpop.sfrf %126 }
  0x53   :  { %p141_p13 = scmp.ne.s32.totalorder %s127_s22, 0 }
  0x55   :  { %131 = shalt.err (%p141_p13)  }

</bundles_post_ra>
